<compile_context>
chip_gen: v5e
topology: v5e:2x2
jax: 0.10.0
libtpu: 0.0.40
codegen_flags: <defaults>
</compile_context>

<pallas_src>
import jax
import jax.numpy as jnp
from jax import lax
from jax.experimental import pallas as pl
from jax.experimental.pallas import tpu as pltpu

B, IN, OUT = 5, 10, 10


def linear_kernel(x_ref, w_ref, b_ref, o_ref):
    # x: (B, IN), w: (OUT, IN) — contract both on their last dim (x @ W.T),
    # f32 accumulation on the MXU, then broadcasted bias add on the VPU.
    acc = lax.dot_general(
        x_ref[...],
        w_ref[...],
        dimension_numbers=(((1,), (1,)), ((), ())),
        preferred_element_type=jnp.float32,
    )
    o_ref[...] = (acc + b_ref[...]).astype(o_ref.dtype)


def linear_pallas(x, w, b):
    # b as (1, OUT) so the in-kernel broadcast is a plain vreg add.
    b2d = b.reshape(1, OUT)
    bytes_accessed = 4 * (x.size + w.size + b2d.size + x.shape[0] * OUT)
    return pl.pallas_call(
        linear_kernel,
        out_shape=jax.ShapeDtypeStruct((x.shape[0], OUT), x.dtype),
        in_specs=[
            pl.BlockSpec(memory_space=pltpu.MemorySpace.VMEM),
            pl.BlockSpec(memory_space=pltpu.MemorySpace.VMEM),
            pl.BlockSpec(memory_space=pltpu.MemorySpace.VMEM),
        ],
        out_specs=pl.BlockSpec(memory_space=pltpu.MemorySpace.VMEM),
        cost_estimate=pl.CostEstimate(
            flops=2 * x.shape[0] * IN * OUT,
            transcendentals=0,
            bytes_accessed=bytes_accessed,
        ),
    )(x, w, b2d)


if __name__ == "__main__":
    key = jax.random.PRNGKey(0)
    kx, kw, kb = jax.random.split(key, 3)

    # Input: matches torch.randn(5, 10)
    x = jax.random.normal(kx, (B, IN), dtype=jnp.float32)

    # Deterministic nn.Linear(10, 10)-style init: U(-1/sqrt(IN), 1/sqrt(IN)),
    # weight kept in PyTorch's native (OUT, IN) layout.
    bound = 1.0 / jnp.sqrt(jnp.float32(IN))
    w = jax.random.uniform(kw, (OUT, IN), dtype=jnp.float32, minval=-bound, maxval=bound)
    b = jax.random.uniform(kb, (OUT,), dtype=jnp.float32, minval=-bound, maxval=bound)

    y = linear_pallas(x, w, b)
    jax.block_until_ready(y)

    # Reference check against plain JAX (x @ W.T + b, PyTorch semantics)
    y_ref = x @ w.T + b
    assert jnp.allclose(y, y_ref, atol=1e-5, rtol=1e-5)

    print("KERNEL_OK")
</pallas_src>

<mosaic_0001>
module attributes {stable_mosaic.version = 11 : i64} {
  func.func @linear_kernel(%arg0: memref<5x10xf32, #tpu.memory_space<vmem>>, %arg1: memref<10x10xf32, #tpu.memory_space<vmem>>, %arg2: memref<1x10xf32, #tpu.memory_space<vmem>>, %arg3: memref<5x10xf32, #tpu.memory_space<vmem>>) attributes {dimension_semantics = [], scalar_prefetch = 0 : i64, scratch_operands = 0 : i64, tpu.core_type = #tpu.core_type<tc>} {
    %c0 = arith.constant 0 : index
    %c0_0 = arith.constant 0 : index
    %0 = vector.load %arg0[%c0, %c0_0] : memref<5x10xf32, #tpu.memory_space<vmem>>, vector<5x10xf32>
    %c0_1 = arith.constant 0 : index
    %c0_2 = arith.constant 0 : index
    %1 = vector.load %arg1[%c0_1, %c0_2] : memref<10x10xf32, #tpu.memory_space<vmem>>, vector<10x10xf32>
    %cst = arith.constant dense<0.000000e+00> : vector<5x10xf32>
    %2 = tpu.matmul %0, %1, %cst {dimension_numbers = #tpu.dot_dimension_numbers<[1], [1], [0], [0], [0, 0, 1, 0], [], []>} : vector<5x10xf32>, vector<10x10xf32>, vector<5x10xf32> -> vector<5x10xf32>
    %c0_3 = arith.constant 0 : index
    %c0_4 = arith.constant 0 : index
    %3 = vector.load %arg2[%c0_3, %c0_4] : memref<1x10xf32, #tpu.memory_space<vmem>>, vector<1x10xf32>
    %4 = vector.broadcast %3 : vector<1x10xf32> to vector<5x10xf32>
    %5 = arith.addf %2, %4 : vector<5x10xf32>
    %c0_5 = arith.constant 0 : index
    %c0_6 = arith.constant 0 : index
    %6 = vector.load %arg3[%c0_5, %c0_6] : memref<5x10xf32, #tpu.memory_space<vmem>>, vector<5x10xf32>
    tpu.vector_store %arg3[%c0_5, %c0_6], %5 {strides = array<i32>} : memref<5x10xf32, #tpu.memory_space<vmem>>, vector<5x10xf32>,
    return
  }
}

</mosaic_0001>

<bundles_post_ra>
// kernel: tpu_custom_call.1
= control target key start
LH: loop header
LB: loop body
LE: loop exit
PB: predicated region body
PF: predicated region fallthrough
CT: control target
= control target key end

     0   :  { %8 = vsyncpa [#allocation3], 0  ;;  %s226_s0 = inlined_call_operand.hbm [shape: f32[5,10], index: 0, kind: input, shape index: {}]   ;;  %s227_s1 = inlined_call_operand.hbm [shape: f32[10,10], index: 1, kind: input, shape index: {}]   ;;  %s228_s2 = inlined_call_operand.vmem [shape: f32[1,10], index: 2, kind: input, shape index: {}]   ;;  %s229_s3 = inlined_call_operand.hbm [shape: f32[5,10], index: 3, kind: output, shape index: {}]  }
   0x1   :  { %9 = vsyncpa [#allocation6], 0 }
   0x2   :  { %10 = vsyncpa [#allocation4], 0  ;;  %s16_s14 = sshll.u32 %s226_s0, 4  ;;  %s189_s15 = smov [#allocation2]   ;;  %s17_s14 = int_to_ptr.hbm [resolvable:$true] %s16_s14 }
   0x3   :  { %s18_s16 = sshll.u32 %s189_s15, 4  ;;  %s26_s19 = sshll.u32 %s227_s1, 4  ;;  %s19_s16 = int_to_ptr.vmem [resolvable:$true] %s18_s16  ;;  %s27_s19 = int_to_ptr.hbm [resolvable:$true] %s26_s19 }
   0x4   :  { %21 = dma.hbm_to_vmem [thread:$0]  %s17_s14, 128, %s19_s16, [#allocation3]  }
   0x5   :  { %s190_s20 = smov [#allocation5]   ;;  %s191_s22 = smov 128  }
   0x6   :  { %s28_s21 = sshll.u32 %s190_s20, 4  ;;  %s192_s23 = smov 8   ;;  %s29_s21 = int_to_ptr.vmem [resolvable:$true] %s28_s21 }
   0x7   :  { %34 = dma.hbm_to_vmem [thread:$0]  %s27_s19, 256, %s29_s21, [#allocation6], %s191_s22, %s191_s22, %s192_s23  }
   0x8   :  { %183 = dma.done.wait [#allocation3], 128  }
   0x9   :  { %184 = vsyncadd [#allocation3], 4294967168 }
   0xa   :  { %185 = dma.done.wait [#allocation6], 256  }
   0xb   :  { %186 = vsyncadd [#allocation6], 4294967040  ;;  %vm52_vm0 = vcmask 80896   ;;  %v47_v0 = vld [vmem:[#allocation5 + $0x8] sm:$0x3]  ;;  %v46_v1 = vld [vmem:[#allocation5] sm:$0xff] }
   0xc   :  { %102 = vmatpush.xpose.msk.msra.mxu0 %vm52_vm0, %v47_v0  ;;  %v45_v2 = vld [vmem:[#allocation2] sm:$0x1f]  ;;  %s193_s24 = smov [#allocation7]   ;;  %s91_s28 = sshll.u32 %s229_s3, 4  ;;  %vm82_vm1 = vcmask 77824   ;;  %s92_s28 = int_to_ptr.hbm [resolvable:$true] %s91_s28 }
   0xd   :  { %v110_v3 = vld [vmem:[%s228_s2] ss:$0 sm:$0xff]  ;;  %s89_s25 = sshll.u32 %s193_s24, 4  ;;  %s90_s25 = int_to_ptr.vmem [resolvable:$true] %s89_s25 }
  0x10   :  { %103 = vmatpush.xpose.msk.msra.mxu0 %vm52_vm0, %v46_v1 }
  0x13   :  { %104 = vmatmul.msk.f32.vlgmr.msra.gmra.mxu0 %vm52_vm0, %v45_v2 }
  0x90   :  { %v79_v4 = vpop.f32.mrf.mxu0 }
  0x91   :  { %v80_v5 = vadd.f32 %v110_v3, %v79_v4 }
  0x93   :  { %83 = vst.msk [vmem:[#allocation7] sm:$0x1f] %vm82_vm1, %v80_v5 }
  0x94   :  { %94 = dma.vmem_to_hbm [thread:$0]  %s90_s25, 128, %s92_s28, [#allocation4]  }
  0x95   :  { %187 = dma.done.wait [#allocation4], 128  }
  0x96   :  { %188 = vsyncadd [#allocation4], 4294967168 }
  0x97   :  { %99 = vsyncpa [#allocation3], 1 }
  0x98   :  { %100 = vsyncpa [#allocation6], 1 }
  0x99   :  { %101 = vsyncpa [#allocation4], 1 }

</bundles_post_ra>
